<compile_context>
chip_gen: v7x
topology: tpu7x:2x2x1
jax: 0.10.0
libtpu: 0.0.40
codegen_flags: <defaults>
</compile_context>

<pallas_src>
import functools

import jax
import jax.numpy as jnp
from jax.experimental import pallas as pl
from jax.experimental.pallas import tpu as pltpu


# ---------------------------------------------------------------------------
# Kernel: one (batch, query-tile) step of the N^2 attention.
# ---------------------------------------------------------------------------
def self_attn_kernel(q_ref, k_ref, v_ref, gamma_ref, o_ref, attn_ref):
    # q_ref   : (1, TQ, Cqp)  bf16   query tile (Cq zero-padded to Cqp)
    # k_ref   : (1, N,  Cqp)  bf16   full keys for this batch element
    # v_ref   : (1, N,  C)    bf16   full values for this batch element
    # gamma_ref: (1,) f32 in SMEM
    # o_ref   : (1, TQ, C)    f32    gamma * (attn @ v)
    # attn_ref: (1, TQ, N)    f32    softmax(q k^T)
    q = q_ref[0]                                        # (TQ, Cqp) bf16
    k = k_ref[0]                                        # (N,  Cqp) bf16

    # energy[i, j] = <q_i, k_j>  — contract last dims, f32 accumulate on MXU.
    energy = jax.lax.dot_general(
        q, k, dimension_numbers=(((1,), (1,)), ((), ())),
        preferred_element_type=jnp.float32)             # (TQ, N) f32

    # Numerically-stable softmax over the full key axis (rows are complete,
    # no online-softmax needed).  Keep everything f32.
    m = jnp.max(energy, axis=-1, keepdims=True)
    e = jnp.exp(energy - m)
    denom = jnp.sum(e, axis=-1, keepdims=True)
    attn = e * pl.reciprocal(denom, approx=True)        # (TQ, N) f32

    # out-tile = attn @ v   (bf16 MXU inputs, f32 accumulate)
    o = jnp.dot(attn.astype(v_ref.dtype), v_ref[0],
                preferred_element_type=jnp.float32)     # (TQ, C) f32

    gamma = gamma_ref[0]                                # scalar from SMEM
    o_ref[0] = gamma * o
    attn_ref[0] = attn


def _pick_block_q(n, block_q):
    """Largest query tile that divides N, is a multiple of 8 (sublane rule) and
    is <= block_q; falls back to the full N (always a legal block shape)."""
    if n <= block_q:
        return n
    for t in range(min(block_q, n), 7, -1):
        if n % t == 0 and t % 8 == 0:
            return t
    return n


# ---------------------------------------------------------------------------
# Forward wrapper.
# ---------------------------------------------------------------------------
def self_attn_forward(x_ncthw, wq, bq, wk, bk, wv, bv, gamma, *, block_q=256):
    """x_ncthw: (B, C, T, H, W) float32.

    Returns (out (B, C, T, H, W) f32, attention (B, N, N) f32) with
    N = T * H * W, matching the PyTorch module.
    """
    B, C, T, H, W = x_ncthw.shape
    N = T * H * W
    Cq = wq.shape[1]

    x_bcn = x_ncthw.reshape(B, C, N)
    cdt = jnp.bfloat16
    xc = x_bcn.astype(cdt)

    # 1x1x1 conv projections == channel GEMMs; XLA owns these (fuses the
    # channel-major layout into the GEMM — no materialized HBM transpose of x).
    q = jnp.einsum('bcn,cq->bnq', xc, wq.astype(cdt),
                   preferred_element_type=jnp.float32) + bq      # (B, N, Cq)
    k = jnp.einsum('bcn,cq->bnq', xc, wk.astype(cdt),
                   preferred_element_type=jnp.float32) + bk      # (B, N, Cq)
    v = jnp.einsum('bcn,cd->bnd', xc, wv.astype(cdt),
                   preferred_element_type=jnp.float32) + bv      # (B, N, C)

    # Zero-pad the tiny Cq = C//8 contraction dim up to a multiple of 128 so the
    # MXU energy matmul runs at full contraction depth (zeros are inert).
    Cqp = pl.cdiv(Cq, 128) * 128
    if Cqp != Cq:
        padding = ((0, 0), (0, 0), (0, Cqp - Cq))
        q = jnp.pad(q, padding)
        k = jnp.pad(k, padding)
    q = q.astype(cdt)
    k = k.astype(cdt)
    v = v.astype(cdt)

    TQ = _pick_block_q(N, block_q)
    grid = (B, N // TQ)          # b outer, query-tile inner (k/v blocks reused)

    o_bnc, attn = pl.pallas_call(
        self_attn_kernel,
        out_shape=(
            jax.ShapeDtypeStruct((B, N, C), jnp.float32),
            jax.ShapeDtypeStruct((B, N, N), jnp.float32),
        ),
        grid_spec=pltpu.PrefetchScalarGridSpec(
            num_scalar_prefetch=0,
            grid=grid,
            in_specs=[
                pl.BlockSpec((1, TQ, Cqp), lambda b, i: (b, i, 0)),   # q tile
                pl.BlockSpec((1, N, Cqp),  lambda b, i: (b, 0, 0)),   # full k
                pl.BlockSpec((1, N, C),    lambda b, i: (b, 0, 0)),   # full v
                pl.BlockSpec(memory_space=pltpu.MemorySpace.SMEM),    # gamma
            ],
            out_specs=[
                pl.BlockSpec((1, TQ, C), lambda b, i: (b, i, 0)),     # gamma*(attn@v)
                pl.BlockSpec((1, TQ, N), lambda b, i: (b, i, 0)),     # attention
            ],
        ),
        compiler_params=pltpu.CompilerParams(
            dimension_semantics=("parallel", "parallel"),
            # Raise above the default scoped limit (16/32 MiB) but stay inside
            # the 64 MiB v7x physical VMEM.
            vmem_limit_bytes=48 * 1024 * 1024,
        ),
    )(q, k, v, gamma)

    # Residual + layout restore: single fused transpose + add in XLA.
    out = jnp.transpose(o_bnc, (0, 2, 1)).reshape(B, C, T, H, W) + x_ncthw
    return out, attn


# ---------------------------------------------------------------------------
# Pure-JAX f32 reference (same math as the PyTorch module).
# ---------------------------------------------------------------------------
def self_attn_reference(x, wq, bq, wk, bk, wv, bv, gamma):
    B, C, T, H, W = x.shape
    N = T * H * W
    xc = x.reshape(B, C, N)
    q = jnp.einsum('bcn,cq->bnq', xc, wq) + bq
    k = jnp.einsum('bcn,cq->bnq', xc, wk) + bk
    v = jnp.einsum('bcn,cd->bnd', xc, wv) + bv
    energy = jnp.einsum('biq,bjq->bij', q, k)
    attn = jax.nn.softmax(energy, axis=-1)
    o = jnp.einsum('bij,bjc->bic', attn, v)
    out = gamma[0] * jnp.transpose(o, (0, 2, 1)).reshape(B, C, T, H, W) + x
    return out, attn


def make_params(key, C):
    """Conv3d(kernel_size=1) weights stored as dense (C_in, C_out) matrices,
    biases as 1-D (C_out,) vectors; gamma = zeros(1) as in the module init."""
    Cq = C // 8
    ks = jax.random.split(key, 6)
    s = 0.1
    wq = s * jax.random.normal(ks[0], (C, Cq), jnp.float32)
    bq = s * jax.random.normal(ks[1], (Cq,), jnp.float32)
    wk = s * jax.random.normal(ks[2], (C, Cq), jnp.float32)
    bk = s * jax.random.normal(ks[3], (Cq,), jnp.float32)
    wv = s * jax.random.normal(ks[4], (C, C), jnp.float32)
    bv = s * jax.random.normal(ks[5], (C,), jnp.float32)
    gamma = jnp.zeros((1,), jnp.float32)
    return wq, bq, wk, bk, wv, bv, gamma


if __name__ == "__main__":
    key = jax.random.PRNGKey(0)
    kx, kp = jax.random.split(key)

    B, C, T, H, W = 2, 16, 2, 4, 4          # in_dim=16 -> query/key channels = 2
    N = T * H * W                           # 32
    x = jax.random.normal(kx, (B, C, T, H, W), jnp.float32)
    wq, bq, wk, bk, wv, bv, gamma0 = make_params(kp, C)

    fwd = jax.jit(functools.partial(self_attn_forward, block_q=16))  # 2 q-tiles

    # gamma == 0 (module init): out must equal x, softmax rows ~ 1.
    out, attn = fwd(x, wq, bq, wk, bk, wv, bv, gamma0)
    jax.block_until_ready((out, attn))
    assert out.shape == (B, C, T, H, W)
    assert attn.shape == (B, N, N)
    assert bool(jnp.allclose(jnp.sum(attn, axis=-1), 1.0, atol=5e-3))  # approx recip
    assert bool(jnp.allclose(out, x, atol=1e-6))

    # gamma != 0: compare against a pure-JAX f32 reference.  bf16 MXU inputs +
    # approx reciprocal => loose tolerances.
    gamma1 = jnp.array([0.5], jnp.float32)
    out1, attn1 = fwd(x, wq, bq, wk, bk, wv, bv, gamma1)
    jax.block_until_ready((out1, attn1))
    ref_out, ref_attn = self_attn_reference(x, wq, bq, wk, bk, wv, bv, gamma1)
    assert bool(jnp.allclose(attn1, ref_attn, atol=5e-3))
    assert bool(jnp.allclose(out1, ref_out, atol=3e-2, rtol=3e-2))

    print("KERNEL_OK")
</pallas_src>

<mosaic_0001>
module attributes {stable_mosaic.version = 11 : i64} {
  func.func @self_attn_kernel(%arg0: i32, %arg1: i32, %arg2: memref<1x16x128xbf16, #tpu.memory_space<vmem>>, %arg3: memref<1x32x128xbf16, #tpu.memory_space<vmem>>, %arg4: memref<1x32x16xbf16, #tpu.memory_space<vmem>>, %arg5: memref<1xf32, #tpu.memory_space<smem>>, %arg6: memref<1x16x16xf32, #tpu.memory_space<vmem>>, %arg7: memref<1x16x32xf32, #tpu.memory_space<vmem>>) attributes {dimension_semantics = [#tpu.dimension_semantics<parallel>, #tpu.dimension_semantics<parallel>], iteration_bounds = array<i64: 2, 2>, scalar_prefetch = 0 : i64, scratch_operands = 0 : i64, tpu.core_type = #tpu.core_type<tc>, window_params = [{transform_indices = @transform_0, window_bounds = array<i64: 1, 16, 128>}, {transform_indices = @transform_1, window_bounds = array<i64: 1, 32, 128>}, {transform_indices = @transform_2, window_bounds = array<i64: 1, 32, 16>}, {transform_indices = @transform_3, window_bounds = array<i64: 1>}, {transform_indices = @transform_4, window_bounds = array<i64: 1, 16, 16>}, {transform_indices = @transform_5, window_bounds = array<i64: 1, 16, 32>}]} {
    %c0 = arith.constant 0 : index
    %c0_0 = arith.constant 0 : index
    %c0_1 = arith.constant 0 : index
    %0 = vector.load %arg2[%c0, %c0_0, %c0_1] : memref<1x16x128xbf16, #tpu.memory_space<vmem>>, vector<1x16x128xbf16>
    %1 = vector.shape_cast %0 : vector<1x16x128xbf16> to vector<16x128xbf16>
    %c0_2 = arith.constant 0 : index
    %c0_3 = arith.constant 0 : index
    %c0_4 = arith.constant 0 : index
    %2 = vector.load %arg3[%c0_2, %c0_3, %c0_4] : memref<1x32x128xbf16, #tpu.memory_space<vmem>>, vector<1x32x128xbf16>
    %3 = vector.shape_cast %2 : vector<1x32x128xbf16> to vector<32x128xbf16>
    %cst = arith.constant dense<0.000000e+00> : vector<16x32xf32>
    %4 = tpu.matmul %1, %3, %cst {dimension_numbers = #tpu.dot_dimension_numbers<[1], [1], [0], [0], [0, 0, 1, 0], [], []>} : vector<16x128xbf16>, vector<32x128xbf16>, vector<16x32xf32> -> vector<16x32xf32>
    %cst_5 = arith.constant dense<0xFF800000> : vector<16xf32>
    %5 = vector.multi_reduction <maximumf>, %4, %cst_5 [1] : vector<16x32xf32> to vector<16xf32>
    %6 = vector.shape_cast %5 : vector<16xf32> to vector<16x1xf32>
    %7 = vector.broadcast %6 : vector<16x1xf32> to vector<16x32xf32>
    %8 = arith.subf %4, %7 : vector<16x32xf32>
    %9 = math.exp %8 : vector<16x32xf32>
    %cst_6 = arith.constant dense<0.000000e+00> : vector<16xf32>
    %10 = vector.multi_reduction <add>, %9, %cst_6 [1] : vector<16x32xf32> to vector<16xf32>
    %11 = vector.shape_cast %10 : vector<16xf32> to vector<16x1xf32>
    %12 = tpu.reciprocal %11 {approx = true} : vector<16x1xf32> -> vector<16x1xf32>
    %13 = vector.broadcast %12 : vector<16x1xf32> to vector<16x32xf32>
    %14 = arith.mulf %9, %13 : vector<16x32xf32>
    %15 = arith.truncf %14 : vector<16x32xf32> to vector<16x32xbf16>
    %c0_7 = arith.constant 0 : index
    %c0_8 = arith.constant 0 : index
    %c0_9 = arith.constant 0 : index
    %16 = vector.load %arg4[%c0_7, %c0_8, %c0_9] : memref<1x32x16xbf16, #tpu.memory_space<vmem>>, vector<1x32x16xbf16>
    %17 = vector.shape_cast %16 : vector<1x32x16xbf16> to vector<32x16xbf16>
    %cst_10 = arith.constant dense<0.000000e+00> : vector<16x16xf32>
    %18 = tpu.matmul %15, %17, %cst_10 {dimension_numbers = #tpu.dot_dimension_numbers<[1], [0], [0], [1], [0, 0, 1, 1], [], []>} : vector<16x32xbf16>, vector<32x16xbf16>, vector<16x16xf32> -> vector<16x16xf32>
    %c0_11 = arith.constant 0 : index
    %19 = memref.load %arg5[%c0_11] : memref<1xf32, #tpu.memory_space<smem>>
    %20 = vector.broadcast %19 : f32 to vector<16x16xf32>
    %21 = arith.mulf %20, %18 : vector<16x16xf32>
    %c0_12 = arith.constant 0 : index
    %c0_13 = arith.constant 0 : index
    %c0_14 = arith.constant 0 : index
    %22 = vector.load %arg6[%c0_12, %c0_13, %c0_14] : memref<1x16x16xf32, #tpu.memory_space<vmem>>, vector<1x16x16xf32>
    %23 = vector.shape_cast %22 : vector<1x16x16xf32> to vector<16x16xf32>
    %24 = vector.shape_cast %21 : vector<16x16xf32> to vector<1x16x16xf32>
    tpu.vector_store %arg6[%c0_12, %c0_13, %c0_14], %24 {strides = array<i32>} : memref<1x16x16xf32, #tpu.memory_space<vmem>>, vector<1x16x16xf32>,
    %c0_15 = arith.constant 0 : index
    %c0_16 = arith.constant 0 : index
    %c0_17 = arith.constant 0 : index
    %25 = vector.load %arg7[%c0_15, %c0_16, %c0_17] : memref<1x16x32xf32, #tpu.memory_space<vmem>>, vector<1x16x32xf32>
    %26 = vector.shape_cast %25 : vector<1x16x32xf32> to vector<16x32xf32>
    %27 = vector.shape_cast %14 : vector<16x32xf32> to vector<1x16x32xf32>
    tpu.vector_store %arg7[%c0_15, %c0_16, %c0_17], %27 {strides = array<i32>} : memref<1x16x32xf32, #tpu.memory_space<vmem>>, vector<1x16x32xf32>,
    return
  }
  func.func @transform_0(%arg0: i32, %arg1: i32) -> (i32, i32, i32) {
    %c0_i32 = arith.constant 0 : i32
    %c0_i32_0 = arith.constant 0 : i32
    return %arg0, %arg1, %c0_i32 : i32, i32, i32
  }
  func.func @transform_1(%arg0: i32, %arg1: i32) -> (i32, i32, i32) {
    %c0_i32 = arith.constant 0 : i32
    %c0_i32_0 = arith.constant 0 : i32
    %c0_i32_1 = arith.constant 0 : i32
    return %arg0, %c0_i32, %c0_i32_0 : i32, i32, i32
  }
  func.func @transform_2(%arg0: i32, %arg1: i32) -> (i32, i32, i32) {
    %c0_i32 = arith.constant 0 : i32
    %c0_i32_0 = arith.constant 0 : i32
    %c0_i32_1 = arith.constant 0 : i32
    return %arg0, %c0_i32, %c0_i32_0 : i32, i32, i32
  }
  func.func @transform_3(%arg0: i32, %arg1: i32) -> i32 {
    %c0_i32 = arith.constant 0 : i32
    %c0_i32_0 = arith.constant 0 : i32
    return %c0_i32 : i32
  }
  func.func @transform_4(%arg0: i32, %arg1: i32) -> (i32, i32, i32) {
    %c0_i32 = arith.constant 0 : i32
    %c0_i32_0 = arith.constant 0 : i32
    return %arg0, %arg1, %c0_i32 : i32, i32, i32
  }
  func.func @transform_5(%arg0: i32, %arg1: i32) -> (i32, i32, i32) {
    %c0_i32 = arith.constant 0 : i32
    %c0_i32_0 = arith.constant 0 : i32
    return %arg0, %arg1, %c0_i32 : i32, i32, i32
  }
}

</mosaic_0001>

<bundles_post_ra>
// kernel: self_attn_forward.1
= control target key start
LH: loop header
LB: loop body
LE: loop exit
PB: predicated region body
PF: predicated region fallthrough
CT: control target
= control target key end

     0   :  { %s1095_s0 = inlined_call_operand.vmem [shape: bf16[2,32,128], index: 0, kind: input, shape index: {}]   ;;  %s1096_s1 = inlined_call_operand.vmem [shape: bf16[2,32,128], index: 1, kind: input, shape index: {}]   ;;  %s1097_s2 = inlined_call_operand.vmem [shape: bf16[2,32,16], index: 2, kind: input, shape index: {}]   ;;  %s1098_s3 = inlined_call_operand.<no memory space> [shape: f32[1], index: 3, kind: input, shape index: {}]   ;;  %s1099_s4 = inlined_call_operand.vmem [shape: f32[2,32,16], index: 4, kind: output, shape index: {0}]   ;;  %s1100_s5 = inlined_call_operand.hbm [shape: f32[2,32,32], index: 5, kind: output, shape index: {1}]  }
   0x1   :  { %11 = sst [smem:[#allocation2]] %s1098_s3 }
   0x2   :  { %12 = vsyncpa [#allocation4], 0 }
   0x3   :  { %14 = vsyncpa [#allocation4 + $0x1], 0  ;;  %s924_s20 = smov 0   ;;  %s926_s21 = smov 0  }
   0x4   :  { %s928_s22 = smov 0   ;;  %s930_s23 = smov 0  }
   0x5   :  { %s932_s24 = smov 0   ;;  %s934_s25 = smov 0  }
   0x6   :  { %s936_s26 = smov 0   ;;  %s938_s27 = smov 0  }
   0x7 LB: > { %s650_s3 = sadd.s32 4294967295, %s884_s27   ;;  %s651_s28 = sadd.s32 4294967294, %s884_s27   ;;  %s884_s27 = sphi %s938_s27, %s20_s27   ;;  %s880_s26 = sphi %s936_s26, %s1109_s26   ;;  %s876_s25 = sphi %s934_s25, %s1108_s25   ;;  %s872_s24 = sphi %s932_s24, %s1107_s24   ;;  %s868_s23 = sphi %s930_s23, %s1106_s23   ;;  %s864_s22 = sphi %s928_s22, %s1105_s22   ;;  %s860_s21 = sphi %s926_s21, %s1104_s21   ;;  %s856_s20 = sphi %s924_s20, %s1103_s20  }
   0x8   : > { %s29_s29 = sadd.s32 1, %s876_s25  ;;  %s32_s30 = sadd.s32 1, %s880_s26 }
   0x9   : > { %p30_p0 = scmp.ge.s32.totalorder %s29_s29, 2  ;;  %p180_p1 = scmp.ne.s32.totalorder %s864_s22, %s860_s21 }
   0xa   : > { %p181_p2 = scmp.eq.s32.totalorder %s650_s3, 3  ;;  %p186_p5 = scmp.ne.s32.totalorder %s860_s21, %s856_s20 }
   0xb   : > { %s1111_s29 = smov (%p30_p0, %s29_s29), 0  ;;  %s1113_s30 = smov (!%p30_p0, %s32_s30), %s880_s26 }
   0xc   : > { %s166_s6 = ssub.s32 %s876_s25, %s1111_s29  ;;  %p975_p3 = por %p181_p2, %p180_p1 }
   0xd   : > { %p34_p4 = scmp.ge.s32.totalorder %s1113_s30, 2  ;;  %p187_p6 = scmp.eq.s32.totalorder %s651_s28, 3 }
   0xe   : > { %p654_p7 = scmp.ge.s32.totalorder %s884_s27, 1  ;;  %p237_p9 = scmp.lt.s32.totalorder %s884_s27, 5 }
   0xf   : > { %s1115_s30 = smov (%p34_p4, %s1113_s30), 0  ;;  %p984_p8 = por %p187_p6, %p186_p5 }
  0x10   : > { %s165_s9 = ssub.s32 %s880_s26, %s1115_s30  ;;  %s170_s10 = sadd.s32 1, %s864_s22 }
  0x11   : > { %s167_s11 = sor.u32 %s166_s6, %s165_s9  ;;  %p238_p10 = pnand %p654_p7, %p237_p9 }
  0x12   : > { %p168_p11 = scmp.eq.s32.totalorder %s167_s11, 0  ;;  %p289_p12 = scmp.lt.s32.totalorder (!%p238_p10), %s872_s24, 1  ;;  %v886_v0 = vmov (!%p238_p10), 0.0   ;;  %vm887_vm0 = vmmov (!%p238_p10), 0   ;;  %vm385_vm1 = vcmask (!%p238_p10), 261120  }
  0x13   : > { %241 = sbr.rel (%p238_p10) target bundleno = 795 (0x31b), region = 36  ;;  %s997_s13 = sshll.u32 (!%p238_p10), %s868_s23, 1  ;;  %686 = vmatprep.subr.bf16.mxu0 (!%p238_p10), %v886_v0  ;;  %690 = vmatprep.mubr.msk.bf16.mxu0 (!%p238_p10), %vm887_vm0, %v886_v0 }
  0x14   : > { %s993_s12 = scalar_select %p168_p11, %s864_s22, %s170_s10  }
  0x15   : > { %p291_p13 = scmp.lt.s32.totalorder (!%p238_p10), %s997_s13, 3  ;;  %694 = vmatprep.subr.bf16.mxu1 (!%p238_p10), %v886_v0  ;;  %698 = vmatprep.mubr.msk.bf16.mxu1 (!%p238_p10), %vm887_vm0, %v886_v0  ;;  %s285_s18 = sand.u32 (!%p238_p10), 1, %s860_s21  }
  0x16   : > { %s655_s19 = sshll.u32 (!%p238_p10), %s285_s18, 4 }
  0x1a   : > { %s1001_s14 = scalar_select %p289_p12, %s872_s24, 1 }
  0x1b   : > { %s292_s15 = scalar_select %p291_p13, %s997_s13, 3 }
  0x1c   : > { %s678_s16 = sshll.u32 %s1001_s14, 4  ;;  %s657_s17 = sshll.u32 %s1001_s14, 2 }
  0x1d   : > { %s302_s23 = scalar_lea.vmem %s1096_s1, %s678_s16  ;;  %s1011_s3 = sadd.s32 %s657_s17, %s292_s15 }
  0x1e   : > { %v777_v1 = vld [vmem:[%s302_s23] sm:$0xff]   ;;  %s658_s28 = sshll.u32 %s1011_s3, 2  ;;  %v778_v2 = vld [vmem:[%s302_s23 + $0x8] sm:$0xff]   ;;  %s307_s17 = scalar_lea.vmem %s1097_s2, %s678_s16 }
  0x1f   : > { %s296_s10 = scalar_lea.vmem %s1095_s0, %s658_s28  ;;  %687 = vmatpush3.bf16.xpose.msra.mxu0 %v777_v1  ;;  %v780_v20 = vld [vmem:[%s307_s17] sm:$0xff]   ;;  %v781_v21 = vld [vmem:[%s307_s17 + $0x8] sm:$0xff]   ;;  %s287_s14 = scalar_lea.vmem [#allocation3], %s655_s19 }
  0x20   : > { %688 = vmatprep.subr.bf16.mxu0 %v886_v0  ;;  %v779_v3 = vld [vmem:[%s296_s10] sm:$0xff]   ;;  %695 = vmatpush3.bf16.msra.mxu1 %v780_v20  ;;  %s674_s16 = sshll.u32 %s872_s24, 2  ;;  %s507_s6 = sshll.u32 %s287_s14, 4  ;;  %s1037_s6 = int_to_ptr.vmem [resolvable:$true] %s507_s6 }
  0x21   : > { %696 = vmatprep.subr.bf16.mxu1 %v886_v0  ;;  %s504_s23 = sadd.s32 %s674_s16, %s997_s13  ;;  %s1039_s15 = scalar_lea.sflag [#allocation4], %s285_s18 }
  0x22   : > { %s675_s28 = sshll.u32 %s504_s23, 7  ;;  %s790_s17 = scalar_lea.vmem %s1037_s6, 256 }
  0x23   : > { %s1035_s11 = scalar_lea.hbm %s1100_s5, %s675_s28  ;;  %p791_p0 = scmp.ne.s32.totalorder %s1037_s6, %s790_s17 }
  0x24   : > { %697 = vmatpush3.bf16.msra.mxu1 %v781_v21  ;;  %s888_s24 = smov [#allocation3]  }
  0x25   : > { %p792_p1 = pnand %p791_p0, %p975_p3  ;;  %s794_s13 = sshll.u32 %s888_s24, 4  ;;  %s795_s13 = int_to_ptr.vmem [resolvable:$false] %s794_s13 }
  0x26   : > { %s796_s19 = scalar_lea.vmem %s795_s13, 512  ;;  %p797_p4 = scmp.lt.s32.totalorder %s1037_s6, %s795_s13 }
  0x27   : > { %689 = vmatpush3.bf16.xpose.msra.mxu0 %v778_v2  ;;  %p793_p2 = pneg %p792_p1  ;;  %p798_p5 = scmp.lt.s32.totalorder %s796_s19, %s790_s17 }
  0x29   : > { %p799_p6 = por %p798_p5, %p797_p4 }
  0x2b   : > { %p800_p7 = pnand %p799_p6, %p793_p2 }
  0x2e   : > { %691 = vmatmul.mubr.bf16.vlgmr.msra.gmra.mrb[0].mxu0 %v779_v3 }
 0x101   : > { %v378_v4 = vpop.f32.mrb[0].mxu0 }
 0x102   : > { %v692_v5 = vpop.f32.mrb[1].mxu0  ;;  %v386_v6 = vsel %vm385_vm1, %v378_v4, -inf }
 0x103   : > { %387 = vmax.xlane.f32.xlu0 %v386_v6  ;;  %v381_v7 = vpop.f32.mrb[2].mxu0 }
 0x104   : > { %v693_v8 = vpop.f32.mrb[3].mxu0  ;;  %v389_v9 = vsel %vm385_vm1, %v381_v7, -inf }
 0x107   : > { %390 = vmax.xlane.f32.xlu0 %v389_v9 }
 0x190   : > { %v388_v10 = vpop.xlane.xlu0 %387 }
 0x191   : > { %v392_v11 = vsub.f32 %v378_v4, %v388_v10 }
 0x193   : > { %v394_v12 = vmul.f32 1.442695, %v392_v11 }
 0x194   : > { %v391_v13 = vpop.xlane.xlu0 %390 }
 0x195   : > { %782 = vpow2.f32 %v394_v12  ;;  %v393_v14 = vsub.f32 %v381_v7, %v391_v13 }
 0x197   : > { %v396_v15 = vmul.f32 1.442695, %v393_v14 }
 0x199   : > { %784 = vpow2.f32 %v396_v15 }
 0x19f   : > { %v783_v16 = vpop.eup %782 }
 0x1a0   : > { %v398_v17 = vsel %vm385_vm1, %v783_v16, 0.0 }
 0x1a1   : > { %399 = vadd.xlane.f32.xlu1 %v398_v17 }
 0x1a3   : > { %v785_v18 = vpop.eup %784 }
 0x1a4   : > { %v401_v19 = vsel %vm385_vm1, %v785_v18, 0.0 }
 0x1a5   : > { %402 = vadd.xlane.f32.xlu1 %v401_v19 }
 0x22e   : > { %v400_v22 = vpop.xlane.xlu1 %399 }
 0x22f   : > { %786 = vrcp.f32 %v400_v22 }
 0x232   : > { %v403_v23 = vpop.xlane.xlu1 %402 }
 0x233   : > { %788 = vrcp.f32 %v403_v23 }
 0x239   : > { %v787_v24 = vpop.eup %786 }
 0x23a   : > { %v406_v25 = vmul.f32 %v787_v24, %v783_v16 }
 0x23c   : > { %476 = vst.msk [vmem:[%s287_s14] sm:$0xff] %vm385_vm1, %v406_v25 }
 0x23d   : > { %v789_v26 = vpop.eup %788 }
 0x23e   : > { %v407_v27 = vmul.f32 %v789_v26, %v785_v18 }
 0x240   : > { %v408_v28 = vpack.c.bf16 %v407_v27, %v406_v25  ;;  %477 = vst.msk [vmem:[%s287_s14 + $0x8] sm:$0xff] %vm385_vm1, %v407_v27 }
 0x242   : > { %699 = vmatmul.mubr.msk.bf16.vlgmr.msra.gmra.mrb[0].mxu1 %vm385_vm1, %v408_v28 }
 0x243   : > { %803 = shalt.err (!%p800_p7)
}
 0x244   : > { %s804_s18 = scalar_lea.hbm %s1035_s11, 256  ;;  %s808_s23 = scalar_lea.hbm %s1100_s5, 1024 }
 0x245   : > { %p805_p9 = scmp.ne.s32.totalorder %s1035_s11, %s804_s18  ;;  %p809_p12 = scmp.lt.u32.totalorder %s1035_s11, %s1100_s5 }
 0x246   : > { %p810_p13 = scmp.lt.u32.totalorder %s808_s23, %s804_s18  ;;  %p812_p1 = scmp.lt.u32.totalorder %s804_s18, %s1035_s11 }
 0x247   : > { %p806_p10 = pnand %p805_p9, %p975_p3 }
 0x248   : > { %p811_p0 = por %p810_p13, %p809_p12 }
 0x249   : > { %p807_p11 = pneg %p806_p10 }
 0x24a   : > { %p813_p2 = por %p812_p1, %p811_p0 }
 0x24c   : > { %p814_p4 = pnand %p813_p2, %p807_p11 }
 0x24e   : > { %817 = shalt.err (!%p814_p4)
}
 0x24f   : > { %s889_s10 = smov 128   ;;  %s890_s17 = smov 8   ;;  %vm473_vm2 = vcmask 130048  }
 0x250   : > { %702 = dma.vmem_to_hbm [thread:$0]  (%p975_p3), %s1037_s6, 256, %s1035_s11, %s1039_s15, %s889_s10, %s889_s10, %s890_s17  }
 0x251   : > { %s469_s24 = sld [smem:[#allocation2]]  ;;  %s665_s13 = sshll.u32 %s1011_s3, 3 }
 0x252   : > { %s316_s16 = scalar_lea.vmem %s1099_s4, %s665_s13 }
 0x257   : > { %v470_v29 = vstv %s469_s24 }
 0x315   : > { %v462_v30 = vpop.f32.mrb[0].mxu1 }
 0x316   : > { %v471_v31 = vmul.f32 %v470_v29, %v462_v30  ;;  %v700_v32 = vpop.f32.mrb[1].mxu1 }
 0x317   : > { %v465_v33 = vpop.f32.mrb[2].mxu1 }
 0x318   : > { %474 = vst.msk [vmem:[%s316_s16] sm:$0xff] %vm473_vm2, %v471_v31  ;;  %v472_v34 = vmul.f32 %v470_v29, %v465_v33  ;;  %v701_v35 = vpop.f32.mrb[3].mxu1 }
 0x31a   : > { %475 = vst.msk [vmem:[%s316_s16 + $0x8] sm:$0xff] %vm473_vm2, %v472_v34 }
 0x31b PF: > { %p708_p3 = scmp.ge.s32.totalorder %s884_s27, 2  ;;  %s534_s7 = sand.u32 1, %s856_s20  }
 0x31c   : > { %s535_s3 = scalar_lea.sflag [#allocation4], %s534_s7 }
 0x31d   : > { %p705_p5 = pnand %p708_p3, %p984_p8 }
 0x31f   : > { %851 = dma.done.wait (!%p705_p5), %s535_s3, 256  }
 0x320   : > { %853 = vsyncadd (!%p705_p5), %s535_s3, 4294967040  ;;  %s20_s27 = sadd.s32 1, %s884_s27   ;;  %s1103_s20 = smov %s860_s21 }
 0x321   : > { %p17_p6 = scmp.ge.s32.totalorder %s20_s27, 6   ;;  %s1104_s21 = smov %s864_s22 }
 0x322   : > { %s1105_s22 = smov %s993_s12  ;;  %s1106_s23 = smov %s876_s25 }
 0x323   : > { %s1107_s24 = smov %s880_s26  ;;  %s1108_s25 = smov %s1111_s29 }
 0x324   : > { %s1109_s26 = smov %s1115_s30  ;;  %19 = sbr.rel (!%p17_p6) target bundleno = 7 (0x7), region = 89 }
 0x32b   :  { %540 = vsyncpa [#allocation4], 1 }
 0x32c   :  { %542 = vsyncpa [#allocation4 + $0x1], 1 }

</bundles_post_ra>
